<compile_context>
chip_gen: v5e
topology: v5e:2x2
jax: 0.10.0
libtpu: 0.0.40
codegen_flags: <defaults>
</compile_context>

<pallas_src>
import math

import jax
import jax.numpy as jnp
from jax.experimental import pallas as pl
from jax.experimental.pallas import tpu as pltpu


# ---------------------------------------------------------------------------
# Parameter / buffer construction (deterministic, in-script)
# ---------------------------------------------------------------------------
def sinusoid_table(n_pos, d_model):
    """Same formula as PositionalEmbedding / FixedEmbedding buffers."""
    pos = jnp.arange(n_pos, dtype=jnp.float32)[:, None]
    div = jnp.exp(
        jnp.arange(0, d_model, 2, dtype=jnp.float32) * (-(math.log(10000.0) / d_model))
    )
    tab = jnp.zeros((n_pos, d_model), dtype=jnp.float32)
    tab = tab.at[:, 0::2].set(jnp.sin(pos * div))
    tab = tab.at[:, 1::2].set(jnp.cos(pos * div))
    return tab


def make_conv_weight(key, c_in, d_model, ksize=3):
    """Kaiming-normal (fan_in, leaky_relu) init of Conv1d weight, laid out as
    (ksize, c_in, d_model) so that w[k, c, d] == torch_weight[d, c, k]."""
    fan_in = c_in * ksize
    gain = math.sqrt(2.0 / (1.0 + 0.01 ** 2))  # leaky_relu default slope
    std = gain / math.sqrt(fan_in)
    return std * jax.random.normal(key, (ksize, c_in, d_model), dtype=jnp.float32)


# Fused temporal table layout: rows [hour(24) | weekday(7) | day(32) | month(13)], pad to 128.
_HOUR, _WDAY, _DAY, _MONTH = 24, 7, 32, 13
_TABLE_ROWS = 128  # padded K width for the multi-hot lookup (>= 76), lane-aligned
# mark columns are [month, day, weekday, hour] -> row offsets into the fused table
_MARK_OFFSETS = (_HOUR + _WDAY + _DAY, _HOUR + _WDAY, _HOUR, 0)


# ---------------------------------------------------------------------------
# Pallas kernel
# ---------------------------------------------------------------------------
def data_embedding_kernel(x_ref, mark_ref, table_ref, wtap_ref, pe_ref, o_ref):
    TB, L, c_in = x_ref.shape          # block of TB batches, full sequence L
    d_model = o_ref.shape[-1]
    rows = TB * L
    T = table_ref.shape[0]             # 128 (padded fused temporal table rows)

    # --- circular conv operands via XLU rolls (free slot; no HBM pad array) ---
    xv3 = x_ref[...]                                        # (TB, L, c_in) f32
    x_m1 = pltpu.roll(xv3, shift=1, axis=1)                 # x[(l-1) % L]
    x_p1 = pltpu.roll(xv3, shift=L - 1, axis=1)             # x[(l+1) % L]
    # im2col stays inside one 128-lane tile (3*c_in << 128) -> cheap, lane-aligned
    im2col = jnp.concatenate(
        [x_m1.reshape(rows, c_in), xv3.reshape(rows, c_in), x_p1.reshape(rows, c_in)],
        axis=-1,
    )                                                        # (rows, 3*c_in) f32

    # --- fused temporal lookup: one multi-hot (rows, T) matrix, indices pre-offset ---
    # (kept in f32 on the VPU; only the final MXU operand is cast to bf16 -- v5e has no bf16 VALU)
    ids = mark_ref[...].reshape(rows, 4)                     # int32, offsets already added
    iota = jax.lax.broadcasted_iota(jnp.int32, (rows, T), 1)
    mh = (ids[:, 0:1] == iota).astype(jnp.float32)
    for c in range(1, 4):
        mh = mh + (ids[:, c:c + 1] == iota).astype(jnp.float32)

    # --- two lane-aligned MXU dots sharing the f32 accumulator (K=128 and K=3*c_in) ---
    acc = jnp.dot(mh.astype(jnp.bfloat16), table_ref[...],
                  preferred_element_type=jnp.float32)        # (rows, d_model)
    acc = acc + jnp.dot(im2col.astype(jnp.bfloat16), wtap_ref[...],
                        preferred_element_type=jnp.float32)

    # --- positional embedding (f32) and lane-dense store ---
    out = acc.reshape(TB, L, d_model) + pe_ref[...][None, :, :]
    # TODO(synk): nn.Dropout(p=0.1) treated as identity (eval mode); training-mode RNG mask not implemented.
    o_ref[...] = out.astype(o_ref.dtype)


# ---------------------------------------------------------------------------
# Wrapper
# ---------------------------------------------------------------------------
def _batch_tile(B, L, target_rows=2048):
    """Pick TB so TB*L ~ target_rows (write-bound: bigger is better), TB <= B, and
    keep >= 2 grid steps when B >= 2 so both v7x TensorCores get work."""
    tb = max(1, target_rows // max(L, 1))
    tb = min(tb, B)
    if B >= 2:
        tb = min(tb, pl.cdiv(B, 2))
    return max(1, tb)


def data_embedding(x, x_mark, w_conv, pe, hour_t, wday_t, day_t, month_t,
                   out_dtype=jnp.float32):
    B, L, c_in = x.shape
    d_model = w_conv.shape[2]
    T = _TABLE_ROWS

    # Fused temporal table (zero-padded to 128 rows) and im2col conv weight: two separate
    # lane-aligned bf16 MXU operands (no 140-wide concat).
    if x_mark is None:
        fused = jnp.zeros((T, d_model), dtype=jnp.float32)
        mark_adj = jnp.zeros((B, L, 4), dtype=jnp.int32)
    else:
        fused = jnp.concatenate([hour_t, wday_t, day_t, month_t], axis=0)   # (76, d_model)
        fused = jnp.pad(fused, ((0, T - fused.shape[0]), (0, 0)))           # (128, d_model)
        offs = jnp.array(_MARK_OFFSETS, dtype=jnp.int32)                    # [month, day, wday, hour]
        mark_adj = x_mark.astype(jnp.int32) + offs[None, None, :]           # (B, L, 4)
    table = fused.astype(jnp.bfloat16)                                      # (128, d_model)
    w_tap = w_conv.reshape(3 * c_in, d_model).astype(jnp.bfloat16)          # (3*c_in, d_model)

    TB = _batch_tile(B, L)
    grid = (pl.cdiv(B, TB),)   # partial final block is masked on writeback

    return pl.pallas_call(
        data_embedding_kernel,
        out_shape=jax.ShapeDtypeStruct((B, L, d_model), out_dtype),
        grid_spec=pltpu.PrefetchScalarGridSpec(
            num_scalar_prefetch=0,
            grid=grid,
            in_specs=[
                pl.BlockSpec((TB, L, c_in), lambda b: (b, 0, 0)),
                pl.BlockSpec((TB, L, 4), lambda b: (b, 0, 0)),
                pl.BlockSpec((T, d_model), lambda b: (0, 0)),
                pl.BlockSpec((3 * c_in, d_model), lambda b: (0, 0)),
                pl.BlockSpec((L, d_model), lambda b: (0, 0)),
            ],
            out_specs=pl.BlockSpec((TB, L, d_model), lambda b: (b, 0, 0)),
        ),
        compiler_params=pltpu.CompilerParams(
            dimension_semantics=("parallel",),
            vmem_limit_bytes=32 << 20,   # explicit: v5e default scoped is only 16 MiB
        ),
    )(x, mark_adj, table, w_tap, pe)


# ---------------------------------------------------------------------------
# Pure-JAX reference (same bf16 rounding on MXU operands, f32 accumulation)
# ---------------------------------------------------------------------------
def data_embedding_ref(x, x_mark, w_conv, pe, hour_t, wday_t, day_t, month_t):
    f32 = jnp.float32
    xb = x.astype(jnp.bfloat16).astype(f32)
    wb = w_conv.astype(jnp.bfloat16).astype(f32)
    hb = hour_t.astype(jnp.bfloat16).astype(f32)
    wdb = wday_t.astype(jnp.bfloat16).astype(f32)
    db = day_t.astype(jnp.bfloat16).astype(f32)
    mb = month_t.astype(jnp.bfloat16).astype(f32)

    x_m1 = jnp.roll(xb, 1, axis=1)
    x_p1 = jnp.roll(xb, -1, axis=1)
    val = (
        jnp.einsum("blc,cd->bld", x_m1, wb[0])
        + jnp.einsum("blc,cd->bld", xb, wb[1])
        + jnp.einsum("blc,cd->bld", x_p1, wb[2])
    )
    temporal = (
        mb[x_mark[..., 0]]
        + db[x_mark[..., 1]]
        + wdb[x_mark[..., 2]]
        + hb[x_mark[..., 3]]
    )
    return val + pe[None] + temporal


# ---------------------------------------------------------------------------
# Main
# ---------------------------------------------------------------------------
if __name__ == "__main__":
    B, L, c_in, d_model = 2, 8, 4, 128  # d_model=128 keeps output stores lane-dense

    key = jax.random.PRNGKey(0)
    k_x, k_w, k_m0, k_m1, k_m2, k_m3 = jax.random.split(key, 6)

    x = jax.random.normal(k_x, (B, L, c_in), dtype=jnp.float32)

    # time features (freq='h'): [month, day, weekday, hour]
    month = jax.random.randint(k_m0, (B, L, 1), 0, _MONTH, dtype=jnp.int32)
    day = jax.random.randint(k_m1, (B, L, 1), 0, _DAY, dtype=jnp.int32)
    weekday = jax.random.randint(k_m2, (B, L, 1), 0, _WDAY, dtype=jnp.int32)
    hour = jax.random.randint(k_m3, (B, L, 1), 0, _HOUR, dtype=jnp.int32)
    x_mark = jnp.concatenate([month, day, weekday, hour], axis=-1)

    # parameters / fixed buffers
    w_conv = make_conv_weight(k_w, c_in, d_model)        # (3, c_in, d_model)
    pe = sinusoid_table(L, d_model)                      # positional (cropped to L)
    hour_t = sinusoid_table(_HOUR, d_model)
    wday_t = sinusoid_table(_WDAY, d_model)
    day_t = sinusoid_table(_DAY, d_model)
    month_t = sinusoid_table(_MONTH, d_model)

    out = data_embedding(x, x_mark, w_conv, pe, hour_t, wday_t, day_t, month_t)
    out = jax.block_until_ready(out)

    ref = data_embedding_ref(x, x_mark, w_conv, pe, hour_t, wday_t, day_t, month_t)
    assert out.shape == (B, L, d_model)
    assert jnp.allclose(out, ref, atol=1e-3, rtol=1e-3), "mismatch vs reference"

    print("KERNEL_OK")
</pallas_src>

<mosaic_0001>
module attributes {stable_mosaic.version = 11 : i64} {
  func.func @data_embedding_kernel(%arg0: i32, %arg1: memref<1x8x4xf32, #tpu.memory_space<vmem>>, %arg2: memref<1x8x4xi32, #tpu.memory_space<vmem>>, %arg3: memref<128x128xbf16, #tpu.memory_space<vmem>>, %arg4: memref<12x128xbf16, #tpu.memory_space<vmem>>, %arg5: memref<8x128xf32, #tpu.memory_space<vmem>>, %arg6: memref<1x8x128xf32, #tpu.memory_space<vmem>>) attributes {dimension_semantics = [#tpu.dimension_semantics<parallel>], iteration_bounds = array<i64: 2>, scalar_prefetch = 0 : i64, scratch_operands = 0 : i64, tpu.core_type = #tpu.core_type<tc>, window_params = [{transform_indices = @transform_0, window_bounds = array<i64: 1, 8, 4>}, {transform_indices = @transform_1, window_bounds = array<i64: 1, 8, 4>}, {pipeline_mode = #tpu.pipeline_mode<synchronous>, transform_indices = @transform_2, window_bounds = array<i64: 128, 128>}, {pipeline_mode = #tpu.pipeline_mode<synchronous>, transform_indices = @transform_3, window_bounds = array<i64: 12, 128>}, {pipeline_mode = #tpu.pipeline_mode<synchronous>, transform_indices = @transform_4, window_bounds = array<i64: 8, 128>}, {transform_indices = @transform_5, window_bounds = array<i64: 1, 8, 128>}]} {
    %c0 = arith.constant 0 : index
    %c0_0 = arith.constant 0 : index
    %c0_1 = arith.constant 0 : index
    %0 = vector.load %arg1[%c0, %c0_0, %c0_1] : memref<1x8x4xf32, #tpu.memory_space<vmem>>, vector<1x8x4xf32>
    %c1_i32 = arith.constant 1 : i32
    %1 = tpu.dynamic_rotate %0 by %c1_i32 dim 1 : vector<1x8x4xf32>, i32 -> vector<1x8x4xf32>
    %c7_i32 = arith.constant 7 : i32
    %2 = tpu.dynamic_rotate %0 by %c7_i32 dim 1 : vector<1x8x4xf32>, i32 -> vector<1x8x4xf32>
    %3 = vector.shape_cast %1 : vector<1x8x4xf32> to vector<8x4xf32>
    %4 = vector.shape_cast %0 : vector<1x8x4xf32> to vector<8x4xf32>
    %5 = vector.shape_cast %2 : vector<1x8x4xf32> to vector<8x4xf32>
    %6 = tpu.concatenate %3, %4, %5 in 1 : vector<8x4xf32>, vector<8x4xf32>, vector<8x4xf32> -> vector<8x12xf32>
    %c0_2 = arith.constant 0 : index
    %c0_3 = arith.constant 0 : index
    %c0_4 = arith.constant 0 : index
    %7 = vector.load %arg2[%c0_2, %c0_3, %c0_4] : memref<1x8x4xi32, #tpu.memory_space<vmem>>, vector<1x8x4xi32>
    %8 = vector.shape_cast %7 : vector<1x8x4xi32> to vector<8x4xi32>
    %9 = tpu.iota {dimensions = array<i32: 1>} : vector<8x128xi32>
    %10 = vector.extract_strided_slice %8 {offsets = [0, 0], sizes = [8, 1], strides = [1, 1]} : vector<8x4xi32> to vector<8x1xi32>
    %11 = vector.broadcast %10 : vector<8x1xi32> to vector<8x128xi32>
    %12 = arith.cmpi eq, %11, %9 : vector<8x128xi32>
    %13 = arith.extui %12 : vector<8x128xi1> to vector<8x128xi32>
    %14 = arith.sitofp %13 : vector<8x128xi32> to vector<8x128xf32>
    %15 = vector.extract_strided_slice %8 {offsets = [0, 1], sizes = [8, 1], strides = [1, 1]} : vector<8x4xi32> to vector<8x1xi32>
    %16 = vector.broadcast %15 : vector<8x1xi32> to vector<8x128xi32>
    %17 = arith.cmpi eq, %16, %9 : vector<8x128xi32>
    %18 = arith.extui %17 : vector<8x128xi1> to vector<8x128xi32>
    %19 = arith.sitofp %18 : vector<8x128xi32> to vector<8x128xf32>
    %20 = arith.addf %14, %19 : vector<8x128xf32>
    %21 = vector.extract_strided_slice %8 {offsets = [0, 2], sizes = [8, 1], strides = [1, 1]} : vector<8x4xi32> to vector<8x1xi32>
    %22 = vector.broadcast %21 : vector<8x1xi32> to vector<8x128xi32>
    %23 = arith.cmpi eq, %22, %9 : vector<8x128xi32>
    %24 = arith.extui %23 : vector<8x128xi1> to vector<8x128xi32>
    %25 = arith.sitofp %24 : vector<8x128xi32> to vector<8x128xf32>
    %26 = arith.addf %20, %25 : vector<8x128xf32>
    %27 = vector.extract_strided_slice %8 {offsets = [0, 3], sizes = [8, 1], strides = [1, 1]} : vector<8x4xi32> to vector<8x1xi32>
    %28 = vector.broadcast %27 : vector<8x1xi32> to vector<8x128xi32>
    %29 = arith.cmpi eq, %28, %9 : vector<8x128xi32>
    %30 = arith.extui %29 : vector<8x128xi1> to vector<8x128xi32>
    %31 = arith.sitofp %30 : vector<8x128xi32> to vector<8x128xf32>
    %32 = arith.addf %26, %31 : vector<8x128xf32>
    %33 = arith.truncf %32 : vector<8x128xf32> to vector<8x128xbf16>
    %c0_5 = arith.constant 0 : index
    %c0_6 = arith.constant 0 : index
    %34 = vector.load %arg3[%c0_5, %c0_6] : memref<128x128xbf16, #tpu.memory_space<vmem>>, vector<128x128xbf16>
    %cst = arith.constant dense<0.000000e+00> : vector<8x128xf32>
    %35 = tpu.matmul %33, %34, %cst {dimension_numbers = #tpu.dot_dimension_numbers<[1], [0], [0], [1], [0, 0, 1, 1], [], []>} : vector<8x128xbf16>, vector<128x128xbf16>, vector<8x128xf32> -> vector<8x128xf32>
    %36 = arith.truncf %6 : vector<8x12xf32> to vector<8x12xbf16>
    %c0_7 = arith.constant 0 : index
    %c0_8 = arith.constant 0 : index
    %37 = vector.load %arg4[%c0_7, %c0_8] : memref<12x128xbf16, #tpu.memory_space<vmem>>, vector<12x128xbf16>
    %cst_9 = arith.constant dense<0.000000e+00> : vector<8x128xf32>
    %38 = tpu.matmul %36, %37, %cst_9 {dimension_numbers = #tpu.dot_dimension_numbers<[1], [0], [0], [1], [0, 0, 1, 1], [], []>} : vector<8x12xbf16>, vector<12x128xbf16>, vector<8x128xf32> -> vector<8x128xf32>
    %39 = arith.addf %35, %38 : vector<8x128xf32>
    %40 = vector.shape_cast %39 : vector<8x128xf32> to vector<1x8x128xf32>
    %c0_10 = arith.constant 0 : index
    %c0_11 = arith.constant 0 : index
    %41 = vector.load %arg5[%c0_10, %c0_11] : memref<8x128xf32, #tpu.memory_space<vmem>>, vector<8x128xf32>
    %42 = vector.shape_cast %41 : vector<8x128xf32> to vector<1x8x128xf32>
    %43 = arith.addf %40, %42 : vector<1x8x128xf32>
    %c0_12 = arith.constant 0 : index
    %c0_13 = arith.constant 0 : index
    %c0_14 = arith.constant 0 : index
    %44 = vector.load %arg6[%c0_12, %c0_13, %c0_14] : memref<1x8x128xf32, #tpu.memory_space<vmem>>, vector<1x8x128xf32>
    tpu.vector_store %arg6[%c0_12, %c0_13, %c0_14], %43 {strides = array<i32>} : memref<1x8x128xf32, #tpu.memory_space<vmem>>, vector<1x8x128xf32>,
    return
  }
  func.func @transform_0(%arg0: i32) -> (i32, i32, i32) {
    %c0_i32 = arith.constant 0 : i32
    %c0_i32_0 = arith.constant 0 : i32
    %c0_i32_1 = arith.constant 0 : i32
    return %arg0, %c0_i32, %c0_i32_0 : i32, i32, i32
  }
  func.func @transform_1(%arg0: i32) -> (i32, i32, i32) {
    %c0_i32 = arith.constant 0 : i32
    %c0_i32_0 = arith.constant 0 : i32
    %c0_i32_1 = arith.constant 0 : i32
    return %arg0, %c0_i32, %c0_i32_0 : i32, i32, i32
  }
  func.func @transform_2(%arg0: i32) -> (i32, i32) {
    %c0_i32 = arith.constant 0 : i32
    %c0_i32_0 = arith.constant 0 : i32
    %c0_i32_1 = arith.constant 0 : i32
    return %c0_i32, %c0_i32_0 : i32, i32
  }
  func.func @transform_3(%arg0: i32) -> (i32, i32) {
    %c0_i32 = arith.constant 0 : i32
    %c0_i32_0 = arith.constant 0 : i32
    %c0_i32_1 = arith.constant 0 : i32
    return %c0_i32, %c0_i32_0 : i32, i32
  }
  func.func @transform_4(%arg0: i32) -> (i32, i32) {
    %c0_i32 = arith.constant 0 : i32
    %c0_i32_0 = arith.constant 0 : i32
    %c0_i32_1 = arith.constant 0 : i32
    return %c0_i32, %c0_i32_0 : i32, i32
  }
  func.func @transform_5(%arg0: i32) -> (i32, i32, i32) {
    %c0_i32 = arith.constant 0 : i32
    %c0_i32_0 = arith.constant 0 : i32
    %c0_i32_1 = arith.constant 0 : i32
    return %arg0, %c0_i32, %c0_i32_0 : i32, i32, i32
  }
}

</mosaic_0001>

<bundles_post_ra>
// kernel: tpu_custom_call.1
= control target key start
LH: loop header
LB: loop body
LE: loop exit
PB: predicated region body
PF: predicated region fallthrough
CT: control target
= control target key end

     0   :  { %10 = vsyncpa [#allocation3], 0  ;;  %s881_s0 = inlined_call_operand.vmem [shape: f32[2,8,4], index: 0, kind: input, shape index: {}]   ;;  %s882_s1 = inlined_call_operand.vmem [shape: s32[2,8,4], index: 1, kind: input, shape index: {}]   ;;  %s883_s2 = inlined_call_operand.hbm [shape: bf16[128,128], index: 2, kind: input, shape index: {}]   ;;  %s884_s3 = inlined_call_operand.vmem [shape: bf16[12,128], index: 3, kind: input, shape index: {}]   ;;  %s885_s4 = inlined_call_operand.vmem [shape: f32[8,128], index: 4, kind: input, shape index: {}]   ;;  %s886_s5 = inlined_call_operand.hbm [shape: f32[2,8,128], index: 5, kind: output, shape index: {}]  }
   0x1   :  { %11 = vsyncpa [#allocation4], 0 }
   0x2   :  { %13 = vsyncpa [#allocation4 + $0x1], 0  ;;  %s774_s18 = smov 0   ;;  %s776_s19 = smov 0  }
   0x3   :  { %s778_s20 = smov 0   ;;  %s780_s21 = smov 0  }
   0x4 LB: > { %s795_s22 = sadd.s32 4294967295, %s732_s21   ;;  %s509_s23 = sadd.s32 4294967294, %s732_s21   ;;  %s732_s21 = sphi %s780_s21, %s892_s21   ;;  %s728_s20 = sphi %s778_s20, %s891_s20   ;;  %s724_s19 = sphi %s776_s19, %s890_s19   ;;  %s720_s18 = sphi %s774_s18, %s889_s18  }
   0x5   : > { %s799_s24 = sadd.s32 1, %s732_s21   ;;  %s141_s25 = sadd.s32 1, %s728_s20 }
   0x6   : > { %s138_s26 = ssub.s32 %s732_s21, %s799_s24  ;;  %p151_p0 = scmp.ne.s32.totalorder %s728_s20, %s724_s19 }
   0x7   : > { %p139_p1 = scmp.eq.s32.totalorder %s138_s26, 0  ;;  %p152_p2 = scmp.eq.s32.totalorder %s795_s22, 1 }
   0x8   : > { %p157_p3 = scmp.ne.s32.totalorder %s724_s19, %s720_s18  ;;  %p158_p4 = scmp.eq.s32.totalorder %s509_s23, 1 }
   0x9   : > { %s810_s27 = scalar_select %p139_p1, %s728_s20, %s141_s25  }
   0xa   : > { %p812_p5 = por %p152_p2, %p151_p0  ;;  %p816_p6 = por %p158_p4, %p157_p3 }
   0xb   : > { %p510_p7 = scmp.ge.s32.totalorder %s732_s21, 1  ;;  %p165_p8 = scmp.lt.s32.totalorder %s732_s21, 3 }
   0xc   : > { %p586_p9 = scmp.eq.s32.totalorder %s795_s22, 0  ;;  %s176_s7 = sshll.u32 %s883_s2, 4  ;;  %s177_s7 = int_to_ptr.hbm [resolvable:$true] %s176_s7 }
   0xd   : > { %p166_p10 = pnand %p510_p7, %p165_p8  ;;  %s734_s8 = smov [#allocation2]  }
   0xe   : > { %s178_s9 = sshll.u32 %s734_s8, 4  ;;  %s735_s10 = smov 64   ;;  %s179_s9 = int_to_ptr.vmem [resolvable:$true] %s178_s9 }
   0xf   : > { %p578_p11 = pneg %p166_p10  ;;  %s736_s11 = smov 4  }
  0x10   : > { %214 = sbr.rel (%p166_p10) target bundleno = 297 (0x129), region = 40 }
  0x11   : > { %p579_p12 = pnand %p586_p9, %p578_p11 }
  0x13   : > { %581 = dma.hbm_to_vmem [thread:$0]  (!%p579_p12), %s177_s7, 1024, %s179_s9, [#allocation3], %s735_s10, %s735_s10, %s736_s11  }
  0x15   : > { %711 = dma.done.wait (%p586_p9), [#allocation3], 1024  }
  0x16   : > { %713 = vsyncadd (%p586_p9), [#allocation3], 4294966272  ;;  %p246_p13 = scmp.lt.s32.totalorder %s795_s22, 1  ;;  %v737_v0 = vmov 0   ;;  %v738_v1 = vmov 2   ;;  %v570_v4 = vld [vmem:[#allocation2 + $0x38] sm:$0xff]  ;;  %v271_v25 = vlaneseq }
  0x17   : > { %631 = vset.pattern.permute.xlu0 %v737_v0  ;;  %633 = vset.pattern.permute.xlu1 %v738_v1  ;;  %s739_s26 = smov 4   ;;  %v569_v5 = vld [vmem:[#allocation2 + $0x30] sm:$0xff]  ;;  %v740_v7 = vmov 1   ;;  %v741_v8 = vmov 3   ;;  %s742_s30 = smov 8   ;;  %v568_v9 = vld [vmem:[#allocation2 + $0x28] sm:$0xff] }
  0x18   : > { %s247_s12 = scalar_select %p246_p13, %s795_s22, 1  ;;  %394 = vmatpush.bf16.msra.mxu1 %v570_v4  ;;  %v524_v10 = vld [vmem:[%s884_s3] sm:$0xf]  ;;  %v571_v11 = vld [vmem:[%s884_s3] sm:$0x30]  ;;  %vm329_vm0 = vcmask 1045504  }
  0x19   : > { %v567_v12 = vld [vmem:[#allocation2 + $0x20] sm:$0xff]  ;;  %v525_v13 = vor.u32 %v571_v11, %v524_v10  ;;  %v566_v15 = vld [vmem:[#allocation2 + $0x18] sm:$0xff]  ;;  %v565_v16 = vld [vmem:[#allocation2 + $0x10] sm:$0xff]  ;;  %vm266_vm1 = vcmask 31744   ;;  %vm268_vm2 = vcmask 64512   ;;  %vm325_vm3 = vcmask 97280  }
  0x1a   : > { %s516_s13 = sshll.u32 %s247_s12, 3  ;;  %v564_v18 = vld [vmem:[#allocation2 + $0x8] sm:$0xff]  ;;  %v563_v20 = vld [vmem:[#allocation2] sm:$0xff]  ;;  %v272_v28 = vand.u32 127, %v271_v25  ;;  %v743_v31 = vmov 0.0   ;;  %s243_s10 = sand.u32 1, %s724_s19  }
  0x1b   : > { %s253_s16 = scalar_lea.vmem %s882_s1, %s516_s13  ;;  %s249_s25 = scalar_lea.vmem %s881_s0, %s516_s13  ;;  %v331_v14 = vsel %vm329_vm0, %v525_v13, 0  ;;  %v407_v43 = vld [vmem:[%s885_s4] sm:$0xff] }
  0x1c   : > { %v270_v2 = vld [vmem:[%s253_s16] sm:$0xff]  ;;  %395 = vmatpush.bf16.msra.mxu1 %v569_v5  ;;  %340 = vmatpush.bf16.msra.mxu0 %v331_v14  ;;  %s515_s11 = sshll.u32 %s243_s10, 3  ;;  %s560_s12 = sshll.u32 %s795_s22, 3 }
  0x1d   : > { %v255_v3 = vld [vmem:[%s249_s25] sm:$0xff]  ;;  %274 = vperm.xlu0 %631, %v270_v2   ;;  %287 = vperm.xlu1 %633, %v270_v2   ;;  %s421_s15 = scalar_lea.hbm %s886_s5, %s560_s12  ;;  %s245_s23 = scalar_lea.vmem [#allocation5], %s515_s11 }
  0x1e   : > { %259 = vrot.lane.b32.xlu2 %v255_v3, %s739_s26  ;;  %v257_v6 = vrot.slane %v255_v3, 1  ;;  %v256_v19 = vrot.slane %v255_v3, 7  ;;  %s423_s25 = sshll.u32 %s245_s23, 4  ;;  %s425_s26 = sshll.u32 %s421_s15, 4  ;;  %s424_s25 = int_to_ptr.vmem [resolvable:$true] %s423_s25  ;;  %s426_s26 = int_to_ptr.hbm [resolvable:$true] %s425_s26 }
  0x1f   : > { %s680_s22 = sshra.s32 %s426_s26, 4  ;;  %s686_s9 = scalar_lea.hbm %s886_s5, 16  ;;  %s681_s22 = int_to_ptr.hbm [resolvable:$true] %s680_s22 }
  0x20   : > { %396 = vmatpush.bf16.msra.mxu1 %v568_v9  ;;  %s682_s6 = scalar_lea.hbm %s681_s22, 8  ;;  %p687_p3 = scmp.lt.s32.totalorder %s681_s22, %s886_s5 }
  0x21   : > { %p683_p0 = scmp.ne.s32.totalorder %s681_s22, %s682_s6  ;;  %p688_p4 = scmp.lt.s32.totalorder %s686_s9, %s682_s6 }
  0x23   : > { %p684_p1 = pnand %p683_p0, %p812_p5  ;;  %p689_p7 = por %p688_p4, %p687_p3 }
  0x24   : > { %397 = vmatpush.bf16.msra.mxu1 %v567_v12 }
  0x25   : > { %632 = vset.pattern.permute.xlu0 %v740_v7  ;;  %634 = vset.pattern.permute.xlu1 %v741_v8  ;;  %p685_p2 = pneg %p684_p1 }
  0x26   : > { %280 = vperm.xlu0 %632, %v270_v2   ;;  %294 = vperm.xlu1 %634, %v270_v2  }
  0x27   : > { %263 = vrot.lane.b32.xlu2 %v257_v6, %s742_s30  ;;  %s411_s30 = scalar_lea.sflag [#allocation4], %s243_s10  ;;  %p690_p8 = pnand %p689_p7, %p685_p2 }
  0x28   : > { %398 = vmatpush.bf16.msra.mxu1 %v566_v15 }
  0x2c   : > { %399 = vmatpush.bf16.msra.mxu1 %v565_v16 }
  0x2e   : > { %635 = vset.pattern.permute.xlu0 %v741_v8 }
  0x30   : > { %400 = vmatpush.bf16.msra.mxu1 %v564_v18 }
  0x34   : > { %401 = vmatpush.bf16.msra.mxu1 %v563_v20 }
  0x78   : > { %v260_v17 = vpop.permute.xlu2 %259 }
  0x79   : > { %v267_v21 = vsel %vm266_vm1, %v256_v19, %v260_v17 }
  0x81   : > { %v264_v22 = vpop.permute.xlu2 %263 }
  0x82   : > { %v269_v23 = vsel %vm268_vm2, %v267_v21, %v264_v22 }
  0x83   : > { %v317_v24 = vpack.c.bf16 %v269_v23, %v269_v23 }
  0x85   : > { %526 = vmatmul.msk.bf16.vlgmr.msra.gmra.mxu0 %vm325_vm3, %v317_v24 }
  0x8f   : > { %v275_v26 = vpop.permute.xlu0 %274  ;;  %v288_v27 = vpop.permute.xlu1 %287 }
  0x90   : > { %vm276_vm4 = vcmp.eq.s32.totalorder %v275_v26, %v272_v28  ;;  %vm289_vm5 = vcmp.eq.s32.totalorder %v288_v27, %v272_v28 }
  0x91   : > { %v518_v32 = vsel %vm276_vm4, 1.0, %v743_v31  ;;  %v520_v35 = vsel %vm289_vm5, 1.0, %v743_v31 }
  0x98   : > { %v281_v29 = vpop.permute.xlu0 %280  ;;  %v295_v30 = vpop.permute.xlu1 %294 }
  0x99   : > { %vm282_vm6 = vcmp.eq.s32.totalorder %v281_v29, %v272_v28  ;;  %vm296_vm7 = vcmp.eq.s32.totalorder %v295_v30, %v272_v28 }
  0x9a   : > { %v519_v33 = vsel %vm282_vm6, 1.0, %v743_v31  ;;  %v521_v36 = vsel %vm296_vm7, 1.0, %v743_v31 }
  0x9b   : > { %v285_v34 = vadd.f32 %v519_v33, %v518_v32 }
  0x9d   : > { %v292_v37 = vadd.f32 %v520_v35, %v285_v34 }
  0x9f   : > { %v299_v38 = vadd.f32 %v521_v36, %v292_v37 }
  0xa1   : > { %v300_v39 = vpack.c.bf16 %v299_v38, %v299_v38 }
  0xa3   : > { %402 = vmatmul.bf16.vlgmr.msra.gmra.mxu1 %v300_v39 }
 0x102   : > { %v342_v40 = vpop.f32.mrf.mxu0 }
 0x10a   : > { %v344_v41 = vpop.f32.mrf.mxu0 }
 0x120   : > { %v403_v42 = vpop.f32.mrf.mxu1 }
 0x121   : > { %v404_v44 = vadd.f32 %v403_v42, %v342_v40 }
 0x123   : > { %v408_v45 = vadd.f32 %v407_v43, %v404_v44 }
 0x125   : > { %409 = vst [vmem:[%s245_s23] sm:$0xff] %v408_v45 }
 0x126   : > { %693 = shalt.err (!%p690_p8)
}
 0x127   : > { %576 = dma.vmem_to_hbm [thread:$0]  (%p812_p5), %s424_s25, 128, %s426_s26, %s411_s30  }
 0x128   : > { %v405_v46 = vpop.f32.mrf.mxu1 }
 0x129 PF: > { %p588_p9 = scmp.ge.s32.totalorder %s732_s21, 2  ;;  %s437_s10 = sand.u32 1, %s720_s18  }
 0x12a   : > { %s438_s13 = scalar_lea.sflag [#allocation4], %s437_s10 }
 0x12b   : > { %p583_p10 = pnand %p588_p9, %p816_p6 }
 0x12d   : > { %p584_p11 = pneg %p583_p10 }
 0x12f   : > { %715 = dma.done.wait (%p584_p11), %s438_s13, 128  }
 0x130   : > { %717 = vsyncadd (%p584_p11), %s438_s13, 4294967168  ;;  %p16_p12 = scmp.ge.s32.totalorder %s799_s24, 4   ;;  %s889_s18 = smov %s724_s19 }
 0x131   : > { %s890_s19 = smov %s728_s20  ;;  %s891_s20 = smov %s810_s27 }
 0x132   : > { %s892_s21 = smov %s799_s24  ;;  %18 = sbr.rel (!%p16_p12) target bundleno = 4 (0x4), region = 83 }
 0x137   :  { %444 = vsyncpa [#allocation3], 1 }
 0x138   :  { %446 = vsyncpa [#allocation3 + $0x1], 1 }
 0x139   :  { %447 = vsyncpa [#allocation4], 1 }
 0x13a   :  { %449 = vsyncpa [#allocation4 + $0x1], 1 }

</bundles_post_ra>
